<compile_context>
chip_gen: v7x
topology: tpu7x:2x2x1
jax: 0.10.0
libtpu: 0.0.40
codegen_flags: <defaults>
</compile_context>

<pallas_src>
import functools

import jax
import jax.numpy as jnp
from jax.experimental import pallas as pl
from jax.experimental.pallas import tpu as pltpu

_LANE = 128


def _round_up(n, m):
    return ((n + m - 1) // m) * m


def _heads_kernel(x_ref, w_ref, b_ref, *o_refs, slices):
    """One fused MXU matmul (f32 accumulation) + bias; per-head outputs.

    w_ref is (D, Np) with each head occupying its own 128-lane-aligned column
    group, so every slice offset below is a multiple of 128 (lane-aligned).
    """
    acc = jnp.dot(x_ref[...], w_ref[...], preferred_element_type=jnp.float32)
    acc = acc + b_ref[...]                      # broadcast bias, VPU work hides under store
    for o_ref, (off, n) in zip(o_refs, slices):
        o_ref[...] = acc[:, off:off + n].astype(o_ref.dtype)


@functools.partial(jax.jit, static_argnames=("head_dims", "slices", "batch_tile"))
def _fused_heads_call(x, w_fused, b_fused, head_dims, slices, batch_tile=512):
    """Run all heads in ONE pallas_call; returns one (B, n_i) array per head.

    x: (B, D); w_fused: (D, Np); b_fused: (1, Np); Np a multiple of 128 with
    each head lane-group aligned.  head_dims/slices are static tuples.
    """
    B, D = x.shape
    Dw, Np = w_fused.shape
    assert D == Dw and b_fused.shape == (1, Np)

    out_shape = tuple(jax.ShapeDtypeStruct((B, n), x.dtype) for n in head_dims)
    kernel = functools.partial(_heads_kernel, slices=slices)
    n_out = sum(head_dims)
    cost = pl.CostEstimate(
        flops=2 * B * D * Np,
        transcendentals=0,
        bytes_accessed=4 * (B * D + D * Np + Np + B * n_out),
    )

    if B <= batch_tile:
        # Gridless full-block path: one launch, everything in VMEM, no
        # pipeline setup or double-buffering of tiles that can't be reused.
        return pl.pallas_call(
            kernel,
            out_shape=out_shape,
            in_specs=[pl.BlockSpec(memory_space=pltpu.MemorySpace.VMEM)] * 3,
            out_specs=tuple(
                pl.BlockSpec(memory_space=pltpu.MemorySpace.VMEM)
                for _ in head_dims
            ),
            cost_estimate=cost,
        )(x, w_fused, b_fused)

    # Batch-tiled path: B is large enough that a single block would lose all
    # pipelining (and eventually VMEM).  Tile the batch axis; weights/bias map
    # to block (0, 0) every step so they stay resident in VMEM.
    TB = batch_tile
    grid = (pl.cdiv(B, TB),)
    in_specs = [
        pl.BlockSpec((TB, D), lambda i: (i, 0)),
        pl.BlockSpec((D, Np), lambda i: (0, 0)),
        pl.BlockSpec((1, Np), lambda i: (0, 0)),
    ]
    out_specs = tuple(pl.BlockSpec((TB, n), lambda i: (i, 0)) for n in head_dims)
    # Per-tile VMEM (double-buffered) is ~2*(TB*D + TB*n_out + D*Np)*4 bytes
    # which is well under the default scoped limit on v5e/v6e/v7x at these
    # widths, so no vmem_limit_bytes override is needed.
    return pl.pallas_call(
        kernel,
        out_shape=out_shape,
        grid=grid,
        in_specs=in_specs,
        out_specs=out_specs,
        cost_estimate=cost,
        compiler_params=pltpu.CompilerParams(
            dimension_semantics=("parallel",),
        ),
    )(x, w_fused, b_fused)


class LinearHead:
    """Submodule analogue: __call__(x) returns {name: x @ W + b}."""

    def __init__(self, name, key, in_features, out_features):
        kw, kb = jax.random.split(key)
        self.name = name
        self.in_features = in_features
        self.out_features = out_features
        self.w = jax.random.normal(
            kw, (in_features, out_features), jnp.float32) * 0.05
        self.b = jax.random.normal(
            kb, (1, out_features), jnp.float32) * 0.01
        # Lane-padded copies for the standalone (non-fused) fallback path.
        n_pad = _round_up(out_features, _LANE)
        self._w_pad = jnp.pad(self.w, ((0, 0), (0, n_pad - out_features)))
        self._b_pad = jnp.pad(self.b, ((0, 0), (0, n_pad - out_features)))

    def __call__(self, x):
        (y,) = _fused_heads_call(
            x, self._w_pad, self._b_pad,
            head_dims=(self.out_features,),
            slices=((0, self.out_features),),
        )
        return {self.name: y}


class ConcatModels:
    """JAX mirror of the PyTorch ConcatModels container.

    forward(x) runs every submodule on the same x and merges the dict
    outputs.  When all submodules are LinearHead with a common input width,
    the heads are fused into a single lane-group-padded matmul (one
    pallas_call with one output per head) -- numerically identical to running
    each head separately.
    """

    def __init__(self, modules):
        self.modules_list = list(modules)
        self._fusable = (
            len(self.modules_list) > 0
            and all(isinstance(m, LinearHead) for m in self.modules_list)
            and len({m.in_features for m in self.modules_list}) == 1
        )
        if self._fusable:
            blocks_w, blocks_b, slices, head_dims = [], [], [], []
            off = 0
            for m in self.modules_list:
                n = m.out_features
                n_pad = _round_up(n, _LANE)
                # Each head gets its own 128-lane group: zero-pad columns so
                # the in-kernel accumulator slice for this head starts at a
                # lane-aligned offset.  Zero columns produce zero outputs that
                # are never stored (they fall outside every head slice).
                blocks_w.append(jnp.pad(m.w, ((0, 0), (0, n_pad - n))))
                blocks_b.append(jnp.pad(m.b, ((0, 0), (0, n_pad - n))))
                slices.append((off, n))
                head_dims.append(n)
                off += n_pad
            self._w_fused = jnp.concatenate(blocks_w, axis=1)
            self._b_fused = jnp.concatenate(blocks_b, axis=1)
            self._slices = tuple(slices)
            self._head_dims = tuple(head_dims)
            self._head_names = tuple(m.name for m in self.modules_list)

    def __call__(self, x):
        if self._fusable:
            outs = _fused_heads_call(
                x, self._w_fused, self._b_fused,
                head_dims=self._head_dims, slices=self._slices,
            )
            return dict(zip(self._head_names, outs))
        # Generic container path: one call per submodule, merge dicts.
        # TODO(synk): non-LinearHead submodules need their own Pallas kernels.
        out = {}
        for module in self.modules_list:
            out.update(module(x))
        return out


if __name__ == "__main__":
    key = jax.random.PRNGKey(0)
    k_x, k_h0, k_h1, k_xl = jax.random.split(key, 4)

    B, D = 8, 32          # seq=8, hidden=32
    x = jax.random.normal(k_x, (B, D), jnp.float32)

    model = ConcatModels([
        LinearHead("head0", k_h0, D, 16),
        LinearHead("head1", k_h1, D, 64),
    ])

    out = model(x)
    jax.block_until_ready(out)

    # Correctness check against plain-JAX reference of each submodule.
    for head in model.modules_list:
        ref = x @ head.w + head.b
        assert jnp.allclose(out[head.name], ref, atol=1e-5), head.name
    assert set(out.keys()) == {"head0", "head1"}
    assert out["head0"].shape == (B, 16) and out["head1"].shape == (B, 64)

    # Exercise the batch-tiled (grid) path once with a larger batch.
    B_large = 2048
    x_large = jax.random.normal(k_xl, (B_large, D), jnp.float32)
    out_large = model(x_large)
    jax.block_until_ready(out_large)
    for head in model.modules_list:
        ref = x_large @ head.w + head.b
        assert jnp.allclose(out_large[head.name], ref, atol=1e-4), head.name
        assert out_large[head.name].shape == (B_large, head.out_features)

    print("KERNEL_OK")
</pallas_src>

<mosaic_0001>
module attributes {stable_mosaic.version = 11 : i64} {
  func.func @_heads_kernel(%arg0: memref<8x32xf32, #tpu.memory_space<vmem>>, %arg1: memref<32x256xf32, #tpu.memory_space<vmem>>, %arg2: memref<1x256xf32, #tpu.memory_space<vmem>>, %arg3: memref<8x16xf32, #tpu.memory_space<vmem>>, %arg4: memref<8x64xf32, #tpu.memory_space<vmem>>) attributes {dimension_semantics = [], scalar_prefetch = 0 : i64, scratch_operands = 0 : i64, tpu.core_type = #tpu.core_type<tc>} {
    %c0 = arith.constant 0 : index
    %c0_0 = arith.constant 0 : index
    %0 = vector.load %arg0[%c0, %c0_0] : memref<8x32xf32, #tpu.memory_space<vmem>>, vector<8x32xf32>
    %c0_1 = arith.constant 0 : index
    %c0_2 = arith.constant 0 : index
    %1 = vector.load %arg1[%c0_1, %c0_2] : memref<32x256xf32, #tpu.memory_space<vmem>>, vector<32x256xf32>
    %cst = arith.constant dense<0.000000e+00> : vector<8x256xf32>
    %2 = tpu.matmul %0, %1, %cst {dimension_numbers = #tpu.dot_dimension_numbers<[1], [0], [0], [1], [0, 0, 1, 1], [], []>} : vector<8x32xf32>, vector<32x256xf32>, vector<8x256xf32> -> vector<8x256xf32>
    %c0_3 = arith.constant 0 : index
    %c0_4 = arith.constant 0 : index
    %3 = vector.load %arg2[%c0_3, %c0_4] : memref<1x256xf32, #tpu.memory_space<vmem>>, vector<1x256xf32>
    %4 = vector.broadcast %3 : vector<1x256xf32> to vector<8x256xf32>
    %5 = arith.addf %2, %4 : vector<8x256xf32>
    %6 = vector.extract_strided_slice %5 {offsets = [0, 0], sizes = [8, 16], strides = [1, 1]} : vector<8x256xf32> to vector<8x16xf32>
    %c0_5 = arith.constant 0 : index
    %c0_6 = arith.constant 0 : index
    %7 = vector.load %arg3[%c0_5, %c0_6] : memref<8x16xf32, #tpu.memory_space<vmem>>, vector<8x16xf32>
    tpu.vector_store %arg3[%c0_5, %c0_6], %6 {strides = array<i32>} : memref<8x16xf32, #tpu.memory_space<vmem>>, vector<8x16xf32>,
    %8 = vector.extract_strided_slice %5 {offsets = [0, 128], sizes = [8, 64], strides = [1, 1]} : vector<8x256xf32> to vector<8x64xf32>
    %c0_7 = arith.constant 0 : index
    %c0_8 = arith.constant 0 : index
    %9 = vector.load %arg4[%c0_7, %c0_8] : memref<8x64xf32, #tpu.memory_space<vmem>>, vector<8x64xf32>
    tpu.vector_store %arg4[%c0_7, %c0_8], %8 {strides = array<i32>} : memref<8x64xf32, #tpu.memory_space<vmem>>, vector<8x64xf32>,
    return
  }
}

</mosaic_0001>

<bundles_post_ra>
// kernel: _fused_heads_call.1
= control target key start
LH: loop header
LB: loop body
LE: loop exit
PB: predicated region body
PF: predicated region fallthrough
CT: control target
= control target key end

     0   :  { %10 = vsyncpa [#allocation3], 0  ;;  %s377_s0 = inlined_call_operand.hbm [shape: f32[8,32], index: 0, kind: input, shape index: {}]   ;;  %s378_s1 = inlined_call_operand.hbm [shape: f32[32,256], index: 1, kind: input, shape index: {}]   ;;  %s379_s2 = inlined_call_operand.vmem [shape: f32[1,256], index: 2, kind: input, shape index: {}]   ;;  %s380_s3 = inlined_call_operand.hbm [shape: f32[8,16], index: 3, kind: output, shape index: {0}]   ;;  %s381_s4 = inlined_call_operand.hbm [shape: f32[8,64], index: 4, kind: output, shape index: {1}]  }
   0x1   :  { %11 = vsyncpa [#allocation6], 0 }
   0x2   :  { %12 = vsyncpa [#allocation4], 0 }
   0x3   :  { %13 = vsyncpa [#allocation9], 0  ;;  %s286_s15 = smov [#allocation2]   ;;  %s287_s17 = smov [#allocation5]  }
   0x4   :  { %s20_s16 = sshll.u32 %s286_s15, 4  ;;  %s29_s18 = sshll.u32 %s287_s17, 4  ;;  %s21_s16 = int_to_ptr.vmem [resolvable:$true] %s20_s16  ;;  %s318_s18 = int_to_ptr.vmem [resolvable:$true] %s29_s18 }
   0x5   :  { %s190_s21 = scalar_lea.hbm %s377_s0, 128 }
   0x6   :  { %p191_p0 = scmp.ne.s32.totalorder %s377_s0, %s190_s21  ;;  %p194_p1 = scmp.lt.u32.totalorder %s190_s21, %s377_s0 }
   0x8   :  { %p196_p2 = pnand %p194_p1, %p191_p0 }
   0xa   :  { %199 = shalt.err (!%p196_p2)
}
   0xb   :  { %s200_s26 = scalar_lea.vmem %s21_s16, 128  ;;  %p205_p4 = scmp.lt.s32.totalorder %s21_s16, %s21_s16 }
   0xc   :  { %p201_p3 = scmp.ne.s32.totalorder %s21_s16, %s200_s26  ;;  %p206_p5 = scmp.lt.s32.totalorder %s200_s26, %s200_s26 }
   0xe   :  { %p207_p6 = por %p206_p5, %p205_p4 }
  0x10   :  { %p208_p7 = pnand %p207_p6, %p201_p3 }
  0x12   :  { %211 = shalt.err (!%p208_p7)
}
  0x13   :  { %23 = dma.hbm_to_vmem [thread:$0]  %s377_s0, 128, %s21_s16, [#allocation3]  }
  0x14   :  { %s212_s5 = scalar_lea.hbm %s378_s1, 1024 }
  0x15   :  { %p213_p8 = scmp.ne.s32.totalorder %s378_s1, %s212_s5  ;;  %p216_p9 = scmp.lt.u32.totalorder %s212_s5, %s378_s1 }
  0x17   :  { %p218_p10 = pnand %p216_p9, %p213_p8 }
  0x19   :  { %221 = shalt.err (!%p218_p10)
}
  0x1a   :  { %s222_s10 = scalar_lea.vmem %s318_s18, 1024  ;;  %p227_p12 = scmp.lt.s32.totalorder %s318_s18, %s318_s18 }
  0x1b   :  { %p223_p11 = scmp.ne.s32.totalorder %s318_s18, %s222_s10  ;;  %p228_p13 = scmp.lt.s32.totalorder %s222_s10, %s222_s10 }
  0x1d   :  { %p229_p0 = por %p228_p13, %p227_p12 }
  0x1f   :  { %p230_p1 = pnand %p229_p0, %p223_p11 }
  0x21   :  { %233 = shalt.err (!%p230_p1)
}
  0x22   :  { %s288_s0 = smov 256   ;;  %s289_s11 = smov 16  }
  0x23   :  { %35 = dma.hbm_to_vmem [thread:$0]  %s378_s1, 1024, %s318_s18, [#allocation6], %s288_s0, %s288_s0, %s289_s11  }
  0x24   :  { %278 = dma.done.wait [#allocation3], 128  }
  0x25   :  { %279 = vsyncadd [#allocation3], 4294967168 }
  0x26   :  { %280 = dma.done.wait [#allocation6], 1024  }
  0x27   :  { %281 = vsyncadd [#allocation6], 4294966272  ;;  %v290_v0 = vmov 0.0   ;;  %v46_v1 = vld [vmem:[#allocation5 + $0x8] sm:$0xff]  ;;  %v48_v2 = vld [vmem:[#allocation5 + $0x18] sm:$0xff]  ;;  %vm65_vm0 = vcmask 261120   ;;  %v55_v14 = vlaneseq }
  0x28   :  { %133 = vmatprep.mubr.f32.mxu0 %v290_v0  ;;  %v45_v3 = vld [vmem:[#allocation5] sm:$0xff]  ;;  %v175_v4 = vpack.c.bf16 %v48_v2, %v46_v1  ;;  %v47_v5 = vld [vmem:[#allocation5 + $0x10] sm:$0xff]  ;;  %v50_v6 = vld [vmem:[#allocation5 + $0x28] sm:$0xff]  ;;  %s291_s15 = smov [#allocation7]   ;;  %s292_s17 = smov [#allocation8]   ;;  %vm140_vm1 = vcmask 130048  }
  0x29   :  { %v52_v7 = vld [vmem:[#allocation5 + $0x38] sm:$0xff]  ;;  %v177_v8 = vpack.c.bf16 %v47_v5, %v45_v3  ;;  %v49_v10 = vld [vmem:[#allocation5 + $0x20] sm:$0xff]  ;;  %v51_v11 = vld [vmem:[#allocation5 + $0x30] sm:$0xff]  ;;  %v56_v15 = vshrl.u32 %v55_v14, 7  ;;  %s150_s16 = sshll.u32 %s291_s15, 4  ;;  %s160_s18 = sshll.u32 %s292_s17, 4  ;;  %s151_s16 = int_to_ptr.vmem [resolvable:$true] %s150_s16  ;;  %s161_s18 = int_to_ptr.vmem [resolvable:$true] %s160_s18 }
  0x2a   :  { %v179_v9 = vpack.c.bf16 %v52_v7, %v50_v6  ;;  %176 = vmatprep.subr.bf16.mxu0 %v175_v4  ;;  %v181_v12 = vpack.c.bf16 %v51_v11, %v49_v10  ;;  %v44_v13 = vld [vmem:[#allocation2] sm:$0xff]  ;;  %vm142_vm2 = vcmask 523264   ;;  %s234_s19 = scalar_lea.vmem %s151_s16, 128  ;;  %p239_p3 = scmp.lt.s32.totalorder %s151_s16, %s151_s16 }
  0x2b   :  { %178 = vmatpush1.bf16.msra.mxu0 %v177_v8  ;;  %v57_v16 = vsub.s32 0, %v56_v15  ;;  %v53_v17 = vld [vmem:[%s379_s2] sm:$0x3]  ;;  %v61_v18 = vsub.s32 1, %v56_v15  ;;  %p235_p2 = scmp.ne.s32.totalorder %s151_s16, %s234_s19  ;;  %p240_p4 = scmp.lt.s32.totalorder %s234_s19, %s234_s19 }
  0x2c   :  { %180 = vmatprep.subr.bf16.mxu0 %v179_v9 }
  0x2d   :  { %v58_v19 = vrot.slane %v53_v17, %v57_v16  ;;  %v62_v20 = vrot.slane %v53_v17, %v61_v18  ;;  %p241_p5 = por %p240_p4, %p239_p3 }
  0x2f   :  { %182 = vmatpush1.bf16.msra.mxu0 %v181_v12  ;;  %p242_p6 = pnand %p241_p5, %p235_p2 }
  0x32   :  { %174 = vmatmul.mubr.msk.f32.vlgmr.msra.gmra.mrb[0].mxu0 %vm65_vm0, %v44_v13 }
 0x105   :  { %v135_v21 = vpop.f32.mrb[0].mxu0 }
 0x106   :  { %v136_v22 = vadd.f32 %v135_v21, %v58_v19  ;;  %v137_v23 = vpop.f32.mrb[1].mxu0 }
 0x107   :  { %v138_v24 = vadd.f32 %v137_v23, %v62_v20 }
 0x108   :  { %141 = vst.msk [vmem:[#allocation7] sm:$0xff] %vm140_vm1, %v136_v22 }
 0x109   :  { %245 = shalt.err (!%p242_p6)
}
 0x10a   :  { %s246_s21 = scalar_lea.hbm %s380_s3, 128 }
 0x10b   :  { %p247_p7 = scmp.ne.s32.totalorder %s380_s3, %s246_s21  ;;  %p250_p8 = scmp.lt.u32.totalorder %s246_s21, %s380_s3 }
 0x10d   :  { %p252_p9 = pnand %p250_p8, %p247_p7 }
 0x10f   :  { %255 = shalt.err (!%p252_p9)
}
 0x110   :  { %153 = dma.vmem_to_hbm [thread:$0]  %s151_s16, 128, %s380_s3, [#allocation4]   ;;  %143 = vst.msk [vmem:[#allocation8] sm:$0xff] %vm142_vm2, %v138_v24 }
 0x111   :  { %s256_s28 = scalar_lea.vmem %s161_s18, 128  ;;  %p261_p11 = scmp.lt.s32.totalorder %s161_s18, %s161_s18 }
 0x112   :  { %p257_p10 = scmp.ne.s32.totalorder %s161_s18, %s256_s28  ;;  %p262_p12 = scmp.lt.s32.totalorder %s256_s28, %s256_s28 }
 0x114   :  { %p263_p13 = por %p262_p12, %p261_p11 }
 0x116   :  { %p264_p0 = pnand %p263_p13, %p257_p10 }
 0x118   :  { %267 = shalt.err (!%p264_p0)
}
 0x119   :  { %s268_s5 = scalar_lea.hbm %s381_s4, 128 }
 0x11a   :  { %p269_p1 = scmp.ne.s32.totalorder %s381_s4, %s268_s5  ;;  %p272_p2 = scmp.lt.u32.totalorder %s268_s5, %s381_s4 }
 0x11c   :  { %p274_p3 = pnand %p272_p2, %p269_p1 }
 0x11e   :  { %277 = shalt.err (!%p274_p3)
}
 0x11f   :  { %163 = dma.vmem_to_hbm [thread:$0]  %s161_s18, 128, %s381_s4, [#allocation9]  }
 0x120   :  { %282 = dma.done.wait [#allocation4], 128  }
 0x121   :  { %283 = vsyncadd [#allocation4], 4294967168 }
 0x122   :  { %284 = dma.done.wait [#allocation9], 128  }
 0x123   :  { %285 = vsyncadd [#allocation9], 4294967168 }
 0x124   :  { %170 = vsyncpa [#allocation3], 1 }
 0x125   :  { %171 = vsyncpa [#allocation6], 1 }
 0x126   :  { %172 = vsyncpa [#allocation4], 1 }
 0x127   :  { %173 = vsyncpa [#allocation9], 1 }

</bundles_post_ra>
